<compile_context>
chip_gen: v6e
topology: v6e:2x2x1
jax: 0.10.0
libtpu: 0.0.40
codegen_flags: <defaults>
</compile_context>

<pallas_src>
import jax
import jax.numpy as jnp
from jax import lax
from jax.experimental import pallas as pl
from jax.experimental.pallas import tpu as pltpu


def _round_up(x, m):
    return ((x + m - 1) // m) * m


def reward_approximator_kernel(
    state_ref,    # (TB, nS)   f32   streamed
    action_ref,   # (TB, 1)    int32 streamed
    w1_ref,       # (nS, H)    f32   resident
    b1_ref,       # (1, H)     f32   resident
    tbl_ref,      # (nA, H)    f32   resident  = relu(W2+b2) @ W3b + b3
    w3a_ref,      # (H, H)     f32   resident
    w4_ref,       # (H, nO)    f32   resident
    b4_ref,       # (1, nO)    f32   resident
    out_ref,      # (TB, nO)   f32
):
    x = state_ref[...]                       # (TB, nS)
    act = action_ref[...]                    # (TB, 1) int32

    # fc1 = relu(state @ W1 + b1)
    fc1 = jnp.dot(x, w1_ref[...], preferred_element_type=jnp.float32)
    fc1 = jnp.maximum(fc1 + b1_ref[...], 0.0)                    # (TB, H)

    # Per-action bias (replaces one-hot matmul + concat): select the action's
    # row of the precomputed table with nA VPU selects (nA is tiny/static).
    tbl = tbl_ref[...]                                           # (nA, H)
    nA = tbl.shape[0]
    abias = jnp.where(act == 0, tbl[0:1, :], 0.0)                # (TB, H)
    for j in range(1, nA):
        abias = jnp.where(act == j, tbl[j:j + 1, :], abias)

    # fc3 = relu(fc1 @ W3a + act_tbl[action])
    fc3 = jnp.dot(fc1, w3a_ref[...], preferred_element_type=jnp.float32)
    fc3 = jnp.maximum(fc3 + abias, 0.0)                          # (TB, H)

    # out = fc3 @ W4 + b4   (unpadded nO columns; block dim == full array dim)
    out = jnp.dot(fc3, w4_ref[...], preferred_element_type=jnp.float32)
    out_ref[...] = out + b4_ref[...]


def reward_approximator(state, action, params, *, tile_b=4096):
    """state: (B, nS) float, action: (B,) int, params: dict (see init_params)."""
    hp = lax.Precision.HIGHEST

    state = state.astype(jnp.float32)
    B, nS = state.shape
    w1, b1 = params["w1"], params["b1"]
    H = w1.shape[1]
    nA = params["w2"].shape[0]
    nO = params["w4"].shape[1]

    # ---- parameter preprocessing (tiny, parameter-only work) ----------------
    # fold the whole fc2 branch + b3 into a per-action bias table (nA, H)
    fc2_tbl = jax.nn.relu(params["w2"] + params["b2"])            # (nA, nA)
    w3a = params["w3"][:H, :]                                     # (H, H)
    w3b = params["w3"][H:, :]                                     # (nA, H)
    act_tbl = jnp.dot(fc2_tbl, w3b, precision=hp) + params["b3"]  # (nA, H)

    # ---- batch tiling --------------------------------------------------------
    # Large tile to amortize per-step overhead; cap for VMEM (lane-padded
    # narrow action/output blocks cost ~TB*512 B each per buffer); keep the
    # grid >= 2 steps when B allows it so v7x's two TensorCores both work.
    tile_b = max(8, min(int(tile_b), 8192))
    half_b = _round_up(pl.cdiv(max(B, 1), 2), 8)
    TB = max(8, min(tile_b, half_b))
    Bp = _round_up(B, TB)
    if Bp != B:
        state = jnp.pad(state, ((0, Bp - B), (0, 0)))
        action = jnp.pad(action, (0, Bp - B))
    action_col = action.astype(jnp.int32).reshape(Bp, 1)
    grid = (Bp // TB,)

    out = pl.pallas_call(
        reward_approximator_kernel,
        out_shape=jax.ShapeDtypeStruct((Bp, nO), jnp.float32),
        grid=grid,
        in_specs=[
            pl.BlockSpec((TB, nS), lambda i: (i, 0)),     # state   (streamed)
            pl.BlockSpec((TB, 1), lambda i: (i, 0)),      # action  (streamed)
            pl.BlockSpec((nS, H), lambda i: (0, 0)),      # W1      (resident)
            pl.BlockSpec((1, H), lambda i: (0, 0)),       # b1      (resident)
            pl.BlockSpec((nA, H), lambda i: (0, 0)),      # act_tbl (resident)
            pl.BlockSpec((H, H), lambda i: (0, 0)),       # W3a     (resident)
            pl.BlockSpec((H, nO), lambda i: (0, 0)),      # W4      (resident)
            pl.BlockSpec((1, nO), lambda i: (0, 0)),      # b4      (resident)
        ],
        out_specs=pl.BlockSpec((TB, nO), lambda i: (i, 0)),
        compiler_params=pltpu.CompilerParams(
            dimension_semantics=("parallel",),
            vmem_limit_bytes=32 * 1024 * 1024,
        ),
    )(state, action_col, w1, b1, act_tbl, w3a, params["w4"], params["b4"])

    return out[:B]


def init_params(key, nS, nA, nO):
    """Deterministic synthetic init mimicking nn.Linear shapes.

    PyTorch nn.Linear(in, out) stores weight as (out, in); here we store the
    transpose (in, out) so the kernel can do x @ W.
    """
    H = nS // 2
    keys = jax.random.split(key, 8)

    def lin(kw, kb, fan_in, fan_out):
        bound = 1.0 / jnp.sqrt(fan_in)
        w = jax.random.uniform(kw, (fan_in, fan_out), jnp.float32, -bound, bound)
        b = jax.random.uniform(kb, (1, fan_out), jnp.float32, -bound, bound)
        return w, b

    w1, b1 = lin(keys[0], keys[1], nS, H)          # fc1: nS -> nS//2
    w2, b2 = lin(keys[2], keys[3], nA, nA)         # fc2: nA -> nA
    w3, b3 = lin(keys[4], keys[5], H + nA, H)      # fc3: nS//2 + nA -> nS//2
    w4, b4 = lin(keys[6], keys[7], H, nO)          # out: nS//2 -> nO
    return dict(w1=w1, b1=b1, w2=w2, b2=b2, w3=w3, b3=b3, w4=w4, b4=b4)


def reward_approximator_ref(state, action, params):
    """Pure-JAX reference, direct translation of the PyTorch forward."""
    hp = lax.Precision.HIGHEST
    nA = params["w2"].shape[0]
    oh = jax.nn.one_hot(action, nA, dtype=jnp.float32)
    fc1 = jax.nn.relu(jnp.dot(state, params["w1"], precision=hp) + params["b1"])
    fc2 = jax.nn.relu(jnp.dot(oh, params["w2"], precision=hp) + params["b2"])
    cat = jnp.concatenate([fc1, fc2], axis=1)
    fc3 = jax.nn.relu(jnp.dot(cat, params["w3"], precision=hp) + params["b3"])
    return jnp.dot(fc3, params["w4"], precision=hp) + params["b4"]


if __name__ == "__main__":
    nS, nA, nO = 32, 4, 2

    key = jax.random.PRNGKey(0)
    k_state, k_action, k_params = jax.random.split(key, 3)
    params = init_params(k_params, nS, nA, nO)

    # small demo batch (single tile)
    B = 8
    state = jax.random.normal(k_state, (B, nS), dtype=jnp.float32)
    action = jax.random.randint(k_action, (B,), 0, nA, dtype=jnp.int32)

    out = reward_approximator(state, action, params)
    out = jax.block_until_ready(out)
    ref = reward_approximator_ref(state, action, params)
    assert out.shape == (B, nO)
    assert jnp.allclose(out, ref, atol=1e-4, rtol=1e-4), "mismatch vs reference (B=8)"

    # larger batch exercising multi-tile grid (>=2 steps) + batch padding
    B2 = 600
    k_s2, k_a2 = jax.random.split(jax.random.PRNGKey(1), 2)
    state2 = jax.random.normal(k_s2, (B2, nS), dtype=jnp.float32)
    action2 = jax.random.randint(k_a2, (B2,), 0, nA, dtype=jnp.int32)

    out2 = reward_approximator(state2, action2, params)
    out2 = jax.block_until_ready(out2)
    ref2 = reward_approximator_ref(state2, action2, params)
    assert out2.shape == (B2, nO)
    assert jnp.allclose(out2, ref2, atol=1e-4, rtol=1e-4), "mismatch vs reference (B=600)"

    print("KERNEL_OK")
</pallas_src>

<mosaic_0001>
module attributes {stable_mosaic.version = 11 : i64} {
  func.func @reward_approximator_kernel(%arg0: i32, %arg1: memref<8x32xf32, #tpu.memory_space<vmem>>, %arg2: memref<8x1xi32, #tpu.memory_space<vmem>>, %arg3: memref<32x16xf32, #tpu.memory_space<vmem>>, %arg4: memref<1x16xf32, #tpu.memory_space<vmem>>, %arg5: memref<4x16xf32, #tpu.memory_space<vmem>>, %arg6: memref<16x16xf32, #tpu.memory_space<vmem>>, %arg7: memref<16x2xf32, #tpu.memory_space<vmem>>, %arg8: memref<1x2xf32, #tpu.memory_space<vmem>>, %arg9: memref<8x2xf32, #tpu.memory_space<vmem>>) attributes {dimension_semantics = [#tpu.dimension_semantics<parallel>], iteration_bounds = array<i64: 1>, scalar_prefetch = 0 : i64, scratch_operands = 0 : i64, tpu.core_type = #tpu.core_type<tc>, window_params = [{transform_indices = @transform_0, window_bounds = array<i64: 8, 32>}, {transform_indices = @transform_1, window_bounds = array<i64: 8, 1>}, {pipeline_mode = #tpu.pipeline_mode<synchronous>, transform_indices = @transform_2, window_bounds = array<i64: 32, 16>}, {pipeline_mode = #tpu.pipeline_mode<synchronous>, transform_indices = @transform_3, window_bounds = array<i64: 1, 16>}, {pipeline_mode = #tpu.pipeline_mode<synchronous>, transform_indices = @transform_4, window_bounds = array<i64: 4, 16>}, {pipeline_mode = #tpu.pipeline_mode<synchronous>, transform_indices = @transform_5, window_bounds = array<i64: 16, 16>}, {pipeline_mode = #tpu.pipeline_mode<synchronous>, transform_indices = @transform_6, window_bounds = array<i64: 16, 2>}, {pipeline_mode = #tpu.pipeline_mode<synchronous>, transform_indices = @transform_7, window_bounds = array<i64: 1, 2>}, {transform_indices = @transform_8, window_bounds = array<i64: 8, 2>}]} {
    %c0 = arith.constant 0 : index
    %c0_0 = arith.constant 0 : index
    %0 = vector.load %arg1[%c0, %c0_0] : memref<8x32xf32, #tpu.memory_space<vmem>>, vector<8x32xf32>
    %c0_1 = arith.constant 0 : index
    %c0_2 = arith.constant 0 : index
    %1 = vector.load %arg2[%c0_1, %c0_2] : memref<8x1xi32, #tpu.memory_space<vmem>>, vector<8x1xi32>
    %c0_3 = arith.constant 0 : index
    %c0_4 = arith.constant 0 : index
    %2 = vector.load %arg3[%c0_3, %c0_4] : memref<32x16xf32, #tpu.memory_space<vmem>>, vector<32x16xf32>
    %cst = arith.constant dense<0.000000e+00> : vector<8x16xf32>
    %3 = tpu.matmul %0, %2, %cst {dimension_numbers = #tpu.dot_dimension_numbers<[1], [0], [0], [1], [0, 0, 1, 1], [], []>} : vector<8x32xf32>, vector<32x16xf32>, vector<8x16xf32> -> vector<8x16xf32>
    %c0_5 = arith.constant 0 : index
    %c0_6 = arith.constant 0 : index
    %4 = vector.load %arg4[%c0_5, %c0_6] : memref<1x16xf32, #tpu.memory_space<vmem>>, vector<1x16xf32>
    %5 = vector.broadcast %4 : vector<1x16xf32> to vector<8x16xf32>
    %6 = arith.addf %3, %5 : vector<8x16xf32>
    %cst_7 = arith.constant 0.000000e+00 : f32
    %7 = vector.broadcast %cst_7 : f32 to vector<8x16xf32>
    %8 = arith.maximumf %6, %7 : vector<8x16xf32>
    %c0_8 = arith.constant 0 : index
    %c0_9 = arith.constant 0 : index
    %9 = vector.load %arg5[%c0_8, %c0_9] : memref<4x16xf32, #tpu.memory_space<vmem>>, vector<4x16xf32>
    %c0_i32 = arith.constant 0 : i32
    %10 = vector.broadcast %c0_i32 : i32 to vector<8x1xi32>
    %11 = arith.cmpi eq, %1, %10 : vector<8x1xi32>
    %12 = vector.extract_strided_slice %9 {offsets = [0, 0], sizes = [1, 16], strides = [1, 1]} : vector<4x16xf32> to vector<1x16xf32>
    %cst_10 = arith.constant 0.000000e+00 : f32
    %13 = vector.shape_cast %11 : vector<8x1xi1> to vector<8x1xi1>
    %14 = vector.broadcast %13 : vector<8x1xi1> to vector<8x16xi1>
    %15 = vector.shape_cast %12 : vector<1x16xf32> to vector<1x16xf32>
    %16 = vector.broadcast %15 : vector<1x16xf32> to vector<8x16xf32>
    %17 = vector.broadcast %cst_10 : f32 to vector<8x16xf32>
    %18 = arith.select %14, %16, %17 : vector<8x16xi1>, vector<8x16xf32>
    %c1_i32 = arith.constant 1 : i32
    %19 = vector.broadcast %c1_i32 : i32 to vector<8x1xi32>
    %20 = arith.cmpi eq, %1, %19 : vector<8x1xi32>
    %21 = vector.extract_strided_slice %9 {offsets = [1, 0], sizes = [1, 16], strides = [1, 1]} : vector<4x16xf32> to vector<1x16xf32>
    %22 = vector.shape_cast %20 : vector<8x1xi1> to vector<8x1xi1>
    %23 = vector.broadcast %22 : vector<8x1xi1> to vector<8x16xi1>
    %24 = vector.shape_cast %21 : vector<1x16xf32> to vector<1x16xf32>
    %25 = vector.broadcast %24 : vector<1x16xf32> to vector<8x16xf32>
    %26 = arith.select %23, %25, %18 : vector<8x16xi1>, vector<8x16xf32>
    %c2_i32 = arith.constant 2 : i32
    %27 = vector.broadcast %c2_i32 : i32 to vector<8x1xi32>
    %28 = arith.cmpi eq, %1, %27 : vector<8x1xi32>
    %29 = vector.extract_strided_slice %9 {offsets = [2, 0], sizes = [1, 16], strides = [1, 1]} : vector<4x16xf32> to vector<1x16xf32>
    %30 = vector.shape_cast %28 : vector<8x1xi1> to vector<8x1xi1>
    %31 = vector.broadcast %30 : vector<8x1xi1> to vector<8x16xi1>
    %32 = vector.shape_cast %29 : vector<1x16xf32> to vector<1x16xf32>
    %33 = vector.broadcast %32 : vector<1x16xf32> to vector<8x16xf32>
    %34 = arith.select %31, %33, %26 : vector<8x16xi1>, vector<8x16xf32>
    %c3_i32 = arith.constant 3 : i32
    %35 = vector.broadcast %c3_i32 : i32 to vector<8x1xi32>
    %36 = arith.cmpi eq, %1, %35 : vector<8x1xi32>
    %37 = vector.extract_strided_slice %9 {offsets = [3, 0], sizes = [1, 16], strides = [1, 1]} : vector<4x16xf32> to vector<1x16xf32>
    %38 = vector.shape_cast %36 : vector<8x1xi1> to vector<8x1xi1>
    %39 = vector.broadcast %38 : vector<8x1xi1> to vector<8x16xi1>
    %40 = vector.shape_cast %37 : vector<1x16xf32> to vector<1x16xf32>
    %41 = vector.broadcast %40 : vector<1x16xf32> to vector<8x16xf32>
    %42 = arith.select %39, %41, %34 : vector<8x16xi1>, vector<8x16xf32>
    %c0_11 = arith.constant 0 : index
    %c0_12 = arith.constant 0 : index
    %43 = vector.load %arg6[%c0_11, %c0_12] : memref<16x16xf32, #tpu.memory_space<vmem>>, vector<16x16xf32>
    %cst_13 = arith.constant dense<0.000000e+00> : vector<8x16xf32>
    %44 = tpu.matmul %8, %43, %cst_13 {dimension_numbers = #tpu.dot_dimension_numbers<[1], [0], [0], [1], [0, 0, 1, 1], [], []>} : vector<8x16xf32>, vector<16x16xf32>, vector<8x16xf32> -> vector<8x16xf32>
    %45 = arith.addf %44, %42 : vector<8x16xf32>
    %cst_14 = arith.constant 0.000000e+00 : f32
    %46 = vector.broadcast %cst_14 : f32 to vector<8x16xf32>
    %47 = arith.maximumf %45, %46 : vector<8x16xf32>
    %c0_15 = arith.constant 0 : index
    %c0_16 = arith.constant 0 : index
    %48 = vector.load %arg7[%c0_15, %c0_16] : memref<16x2xf32, #tpu.memory_space<vmem>>, vector<16x2xf32>
    %cst_17 = arith.constant dense<0.000000e+00> : vector<8x2xf32>
    %49 = tpu.matmul %47, %48, %cst_17 {dimension_numbers = #tpu.dot_dimension_numbers<[1], [0], [0], [1], [0, 0, 1, 1], [], []>} : vector<8x16xf32>, vector<16x2xf32>, vector<8x2xf32> -> vector<8x2xf32>
    %c0_18 = arith.constant 0 : index
    %c0_19 = arith.constant 0 : index
    %50 = vector.load %arg8[%c0_18, %c0_19] : memref<1x2xf32, #tpu.memory_space<vmem>>, vector<1x2xf32>
    %51 = vector.broadcast %50 : vector<1x2xf32> to vector<8x2xf32>
    %52 = arith.addf %49, %51 : vector<8x2xf32>
    %c0_20 = arith.constant 0 : index
    %c0_21 = arith.constant 0 : index
    %53 = vector.load %arg9[%c0_20, %c0_21] : memref<8x2xf32, #tpu.memory_space<vmem>>, vector<8x2xf32>
    tpu.vector_store %arg9[%c0_20, %c0_21], %52 {strides = array<i32>} : memref<8x2xf32, #tpu.memory_space<vmem>>, vector<8x2xf32>,
    return
  }
  func.func @transform_0(%arg0: i32) -> (i32, i32) {
    %c0_i32 = arith.constant 0 : i32
    %c0_i32_0 = arith.constant 0 : i32
    return %arg0, %c0_i32 : i32, i32
  }
  func.func @transform_1(%arg0: i32) -> (i32, i32) {
    %c0_i32 = arith.constant 0 : i32
    %c0_i32_0 = arith.constant 0 : i32
    return %arg0, %c0_i32 : i32, i32
  }
  func.func @transform_2(%arg0: i32) -> (i32, i32) {
    %c0_i32 = arith.constant 0 : i32
    %c0_i32_0 = arith.constant 0 : i32
    %c0_i32_1 = arith.constant 0 : i32
    return %c0_i32, %c0_i32_0 : i32, i32
  }
  func.func @transform_3(%arg0: i32) -> (i32, i32) {
    %c0_i32 = arith.constant 0 : i32
    %c0_i32_0 = arith.constant 0 : i32
    %c0_i32_1 = arith.constant 0 : i32
    return %c0_i32, %c0_i32_0 : i32, i32
  }
  func.func @transform_4(%arg0: i32) -> (i32, i32) {
    %c0_i32 = arith.constant 0 : i32
    %c0_i32_0 = arith.constant 0 : i32
    %c0_i32_1 = arith.constant 0 : i32
    return %c0_i32, %c0_i32_0 : i32, i32
  }
  func.func @transform_5(%arg0: i32) -> (i32, i32) {
    %c0_i32 = arith.constant 0 : i32
    %c0_i32_0 = arith.constant 0 : i32
    %c0_i32_1 = arith.constant 0 : i32
    return %c0_i32, %c0_i32_0 : i32, i32
  }
  func.func @transform_6(%arg0: i32) -> (i32, i32) {
    %c0_i32 = arith.constant 0 : i32
    %c0_i32_0 = arith.constant 0 : i32
    %c0_i32_1 = arith.constant 0 : i32
    return %c0_i32, %c0_i32_0 : i32, i32
  }
  func.func @transform_7(%arg0: i32) -> (i32, i32) {
    %c0_i32 = arith.constant 0 : i32
    %c0_i32_0 = arith.constant 0 : i32
    %c0_i32_1 = arith.constant 0 : i32
    return %c0_i32, %c0_i32_0 : i32, i32
  }
  func.func @transform_8(%arg0: i32) -> (i32, i32) {
    %c0_i32 = arith.constant 0 : i32
    %c0_i32_0 = arith.constant 0 : i32
    return %arg0, %c0_i32 : i32, i32
  }
}

</mosaic_0001>

<bundles_post_ra>
// kernel: tpu_custom_call.1
= control target key start
LH: loop header
LB: loop body
LE: loop exit
PB: predicated region body
PF: predicated region fallthrough
CT: control target
= control target key end

     0   :  { %v373_v0 = vmov 0.0   ;;  %vm374_vm0 = vmmov 0   ;;  %vm42_vm1 = vcmask 261120   ;;  %v375_v8 = vmov 0   ;;  %s468_s2 = inlined_call_operand.vmem [shape: f32[32,16], index: 2, kind: input, shape index: {}]   ;;  %s469_s0 = inlined_call_operand.vmem [shape: f32[8,32], index: 0, kind: input, shape index: {}]   ;;  %s470_s5 = inlined_call_operand.vmem [shape: f32[16,16], index: 5, kind: input, shape index: {}]   ;;  %s471_s1 = inlined_call_operand.vmem [shape: s32[8,1], index: 1, kind: input, shape index: {}]   ;;  %s472_s3 = inlined_call_operand.vmem [shape: f32[1,16], index: 3, kind: input, shape index: {}]   ;;  %s473_s6 = inlined_call_operand.vmem [shape: f32[16,2], index: 6, kind: input, shape index: {}]   ;;  %s474_s4 = inlined_call_operand.vmem [shape: f32[4,16], index: 4, kind: input, shape index: {}]   ;;  %s475_s7 = inlined_call_operand.vmem [shape: f32[1,2], index: 7, kind: input, shape index: {}]   ;;  %s476_s8 = inlined_call_operand.vmem [shape: f32[8,2], index: 8, kind: output, shape index: {}]  }
   0x1   :  { %343 = vmatprep.subr.mxu0 %v373_v0  ;;  %v34_v1 = vld [vmem:[%s468_s2 + $0x18] sm:$0xff]  ;;  %v33_v2 = vld [vmem:[%s468_s2 + $0x10] sm:$0xff]  ;;  %351 = vmatprep.mubr.msk.f32.mxu0 %vm374_vm0, %v373_v0  ;;  %v32_v3 = vld [vmem:[%s468_s2 + $0x8] sm:$0xff]  ;;  %vm164_vm6 = vcmask 130048   ;;  %v124_v21 = vlaneseq  ;;  %vm321_vm11 = vcmask 15360  }
   0x2   :  { %344 = vmatpush3.msra.mxu0 %v34_v1  ;;  %354 = vmatprep.subr.mxu1 %v373_v0  ;;  %v31_v4 = vld [vmem:[%s468_s2] sm:$0xff]  ;;  %v163_v6 = vld [vmem:[%s470_s5 + $0x8] sm:$0xff] }
   0x3   :  { %345 = vmatprep.subr.mxu0 %v373_v0  ;;  %358 = vmatprep.mubr.msk.f32.mxu1 %vm374_vm0, %v373_v0  ;;  %v29_v5 = vld [vmem:[%s469_s0] sm:$0xff]  ;;  %v240_v19 = vld [vmem:[%s473_s6 + $0x8] sm:$0xff]  ;;  %v125_v22 = vshrl.u32 %v124_v21, 7 }
   0x4   :  { %346 = vmatpush3.msra.mxu0 %v33_v2  ;;  %355 = vmatpush3.msra.mxu1 %v163_v6  ;;  %v162_v7 = vld [vmem:[%s470_s5] sm:$0xff] }
   0x5   :  { %347 = vmatprep.subr.mxu0 %v373_v0  ;;  %356 = vmatprep.subr.mxu1 %v373_v0  ;;  %v30_v9 = vld [vmem:[%s471_s1] sm:$0xff]  ;;  %v126_v24 = vsub.s32 0, %v125_v22  ;;  %v137_v26 = vsub.s32 1, %v125_v22  ;;  %v148_v30 = vsub.s32 2, %v125_v22  ;;  %v159_v33 = vsub.s32 3, %v125_v22 }
   0x6   :  { %348 = vmatpush3.msra.mxu0 %v32_v3  ;;  %357 = vmatpush3.msra.mxu1 %v162_v7  ;;  %vm118_vm2 = vcmp.eq.s32.totalorder %v30_v9, 0  ;;  %vm140_vm3 = vcmp.eq.s32.totalorder %v30_v9, 2  ;;  %vm129_vm4 = vcmp.eq.s32.totalorder %v30_v9, 1  ;;  %vm151_vm5 = vcmp.eq.s32.totalorder %v30_v9, 3  ;;  %v327_v14 = vld [vmem:[%s472_s3] ss:$0 sm:$0xff] }
   0x7   :  { %349 = vmatprep.subr.mxu0 %v373_v0  ;;  %361 = vmatprep.subr.mxu1 %v373_v0  ;;  %v119_v10 = vsel %vm118_vm2, 1, %v375_v8  ;;  %v141_v11 = vsel %vm140_vm3, 1, %v375_v8  ;;  %v130_v12 = vsel %vm129_vm4, 1, %v375_v8  ;;  %v152_v13 = vsel %vm151_vm5, 1, %v375_v8  ;;  %v239_v20 = vld [vmem:[%s473_s6] sm:$0xff] }
   0x8   :  { %350 = vmatpush3.msra.mxu0 %v31_v4  ;;  %371 = vset.pattern.permute.xlu0 %v375_v8  ;;  %v117_v25 = vld [vmem:[%s474_s4] sm:$0xf] }
   0x9   :  { %352 = vmatmul.mubr.msk.f32.vlgmr.msra.gmra.mxu0 %vm42_vm1, %v29_v5  ;;  %372 = vset.pattern.permute.xlu1 %v375_v8  ;;  %v127_v27 = vrot.slane %v117_v25, %v126_v24  ;;  %v138_v31 = vrot.slane %v117_v25, %v137_v26  ;;  %v149_v34 = vrot.slane %v117_v25, %v148_v30  ;;  %v330_v44 = vld [vmem:[%s475_s7] ss:$0 sm:$0xff] }
   0xa   :  { %121 = vperm.xlu0 %371, %v119_v10   ;;  %143 = vperm.xlu1 %372, %v141_v11   ;;  %v160_v37 = vrot.slane %v117_v25, %v159_v33 }
   0xe   :  { %132 = vperm.xlu0 %371, %v130_v12   ;;  %154 = vperm.xlu1 %372, %v152_v13  }
  0x85   :  { %v122_v23 = vpop.permute.xlu0 %121  ;;  %v144_v28 = vpop.permute.xlu1 %143 }
  0x86   :  { %vm123_vm7 = vcmp.eq.s32.totalorder %v122_v23, 1  ;;  %vm145_vm9 = vcmp.eq.s32.totalorder %v144_v28, 1 }
  0x87   :  { %v128_v32 = vsel %vm123_vm7, %v127_v27, 0.0 }
  0x89   :  { %v133_v29 = vpop.permute.xlu0 %132  ;;  %v155_v36 = vpop.permute.xlu1 %154 }
  0x8a   :  { %vm134_vm8 = vcmp.eq.s32.totalorder %v133_v29, 1  ;;  %vm156_vm10 = vcmp.eq.s32.totalorder %v155_v36, 1 }
  0x8b   :  { %v139_v35 = vsel %vm134_vm8, %v138_v31, %v128_v32 }
  0x8c   :  { %v150_v38 = vsel %vm145_vm9, %v149_v34, %v139_v35 }
  0x8d   :  { %v161_v39 = vsel %vm156_vm10, %v160_v37, %v150_v38 }
  0xc9   :  { %v112_v15 = vpop.f32.mrf.mxu0 }
  0xca   :  { %v113_v16 = vadd.f32 %v327_v14, %v112_v15 }
  0xcb   :  { %v353_v17 = vpop.f32.mrf.mxu0 }
  0xcc   :  { %v116_v18 = vmax.f32 %v113_v16, 0.0 }
  0xce   :  { %359 = vmatmul.mubr.msk.f32.vlgmr.msra.gmra.mxu1 %vm164_vm6, %v116_v18 }
  0xcf   :  { %365 = vmatprep.mubr.msk.f32.mxu1 %vm374_vm0, %v373_v0  ;;  %362 = vmatpush3.msra.mxu1 %v240_v19 }
  0xd0   :  { %363 = vmatprep.subr.mxu1 %v373_v0 }
  0xd1   :  { %364 = vmatpush3.msra.mxu1 %v239_v20 }
 0x18e   :  { %v234_v40 = vpop.f32.mrf.mxu1 }
 0x18f   :  { %v235_v41 = vadd.f32 %v234_v40, %v161_v39 }
 0x190   :  { %v360_v42 = vpop.f32.mrf.mxu1 }
 0x191   :  { %v238_v43 = vmax.f32 %v235_v41, 0.0 }
 0x193   :  { %366 = vmatmul.mubr.msk.f32.vlgmr.msra.gmra.mxu1 %vm164_vm6, %v238_v43 }
 0x253   :  { %v317_v45 = vpop.f32.mrf.mxu1 }
 0x254   :  { %v318_v46 = vadd.f32 %v330_v44, %v317_v45 }
 0x255   :  { %v367_v47 = vpop.f32.mrf.mxu1 }
 0x256   :  { %322 = vst.msk [vmem:[%s476_s8] sm:$0xff] %vm321_vm11, %v318_v46 }

</bundles_post_ra>
